<compile_context>
chip_gen: v7x
topology: tpu7x:2x2x1
jax: 0.10.0
libtpu: 0.0.40
codegen_flags: <defaults>
</compile_context>

<pallas_src>
import jax
import jax.numpy as jnp
from jax import lax
from jax.experimental import pallas as pl
from jax.experimental.pallas import tpu as pltpu


def _round_up(x, m):
    return ((x + m - 1) // m) * m


def _primarycaps_kernel(patches_ref, wp_ref, bp_ref, wa_ref, ba_ref,
                        pose_ref, act_ref):
    # patches_ref: (tm, Kdim_pad)
    # wp_ref: (Kdim_pad, B*P*P)   bp_ref: (1, B*P*P)
    # wa_ref: (Kdim_pad, B)       ba_ref: (1, B)
    p = patches_ref[...]
    pose = jnp.dot(p, wp_ref[...], preferred_element_type=jnp.float32)
    pose = pose + bp_ref[...]
    act = jnp.dot(p, wa_ref[...], preferred_element_type=jnp.float32)
    act = act + ba_ref[...]
    pose_ref[...] = pose.astype(pose_ref.dtype)
    act_ref[...] = jax.nn.sigmoid(act).astype(act_ref.dtype)


def primary_caps_forward(x, w_pose, b_pose, w_a, b_a, *, K, stride, P, B, tm=512):
    """x: (N, A, H, W) NCHW float32.  Returns (N, H', W', B*(P*P+1))."""
    N, A, H, W = x.shape
    Hp = (H - K) // stride + 1
    Wp = (W - K) // stride + 1
    pose_dim = B * P * P
    Kdim = A * K * K
    Kdim_pad = _round_up(Kdim, 8)

    # --- glue: channels-last im2col (no extra transpose of the big patches
    # tensor).  Feature dim of conv_general_dilated_patches is channel-major
    # (A, kh, kw), exactly matching PyTorch's (Cout, A, K, K) weight flatten.
    x_nhwc = jnp.transpose(x, (0, 2, 3, 1))  # small, done once
    patches = lax.conv_general_dilated_patches(
        x_nhwc,
        filter_shape=(K, K),
        window_strides=(stride, stride),
        padding="VALID",
        dimension_numbers=("NHWC", "HWIO", "NHWC"),
    )  # (N, Hp, Wp, A*K*K)
    patches = patches.reshape(N * Hp * Wp, Kdim)

    # --- glue: weights as matmul operands (PyTorch OIHW -> (Kdim, Cout)) ---
    wp = w_pose.reshape(pose_dim, Kdim).T          # (Kdim, pose_dim)
    wa = w_a.reshape(B, Kdim).T                    # (Kdim, B)
    if Kdim_pad != Kdim:                           # sublane-align K dimension
        patches = jnp.pad(patches, ((0, 0), (0, Kdim_pad - Kdim)))
        wp = jnp.pad(wp, ((0, Kdim_pad - Kdim), (0, 0)))
        wa = jnp.pad(wa, ((0, Kdim_pad - Kdim), (0, 0)))
    bp = b_pose.reshape(1, pose_dim).astype(jnp.float32)
    ba = b_a.reshape(1, B).astype(jnp.float32)

    # --- row tiling: big tiles so the kernel is not grid-overhead bound ---
    M = N * Hp * Wp
    tm = min(tm, _round_up(M, 8))                  # don't over-pad tiny cases
    M_pad = _round_up(M, tm)
    if M_pad != M:
        patches = jnp.pad(patches, ((0, M_pad - M), (0, 0)))

    pose_out, act_out = pl.pallas_call(
        _primarycaps_kernel,
        out_shape=(
            jax.ShapeDtypeStruct((M_pad, pose_dim), jnp.float32),
            jax.ShapeDtypeStruct((M_pad, B), jnp.float32),
        ),
        grid_spec=pltpu.PrefetchScalarGridSpec(
            num_scalar_prefetch=0,
            grid=(M_pad // tm,),
            in_specs=[
                pl.BlockSpec((tm, Kdim_pad), lambda i: (i, 0)),
                pl.BlockSpec((Kdim_pad, pose_dim), lambda i: (0, 0)),
                pl.BlockSpec((1, pose_dim), lambda i: (0, 0)),
                pl.BlockSpec((Kdim_pad, B), lambda i: (0, 0)),
                pl.BlockSpec((1, B), lambda i: (0, 0)),
            ],
            out_specs=(
                pl.BlockSpec((tm, pose_dim), lambda i: (i, 0)),
                pl.BlockSpec((tm, B), lambda i: (i, 0)),
            ),
        ),
        compiler_params=pltpu.CompilerParams(
            dimension_semantics=("parallel",)),
    )(patches, wp, bp, wa, ba)

    out = jnp.concatenate([pose_out[:M], act_out[:M]], axis=-1)
    return out.reshape(N, Hp, Wp, pose_dim + B)


def _reference_forward(x, w_pose, b_pose, w_a, b_a, *, stride):
    """Pure-JAX reference matching the PyTorch forward (NCHW convs)."""
    dn = ("NCHW", "OIHW", "NCHW")
    p = lax.conv_general_dilated(x, w_pose, (stride, stride), "VALID",
                                 dimension_numbers=dn) + b_pose[None, :, None, None]
    a = lax.conv_general_dilated(x, w_a, (stride, stride), "VALID",
                                 dimension_numbers=dn) + b_a[None, :, None, None]
    a = jax.nn.sigmoid(a)
    out = jnp.concatenate([p, a], axis=1)
    return jnp.transpose(out, (0, 2, 3, 1))


if __name__ == "__main__":
    # Small hyperparameters consistent with PrimaryCaps.__init__.
    A, B, K, P, stride = 4, 4, 3, 2, 2
    N, H, W = 2, 16, 16

    key = jax.random.PRNGKey(0)
    kx, kwp, kbp, kwa, kba = jax.random.split(key, 5)

    x = jax.random.normal(kx, (N, A, H, W), dtype=jnp.float32)
    # weight.data.normal_(0.0, 0.1) in the module; deterministic bias init too.
    w_pose = 0.1 * jax.random.normal(kwp, (B * P * P, A, K, K), dtype=jnp.float32)
    b_pose = 0.1 * jax.random.normal(kbp, (B * P * P,), dtype=jnp.float32)
    w_a = 0.1 * jax.random.normal(kwa, (B, A, K, K), dtype=jnp.float32)
    b_a = 0.1 * jax.random.normal(kba, (B,), dtype=jnp.float32)

    out = primary_caps_forward(x, w_pose, b_pose, w_a, b_a,
                               K=K, stride=stride, P=P, B=B)
    out = jax.block_until_ready(out)

    ref = _reference_forward(x, w_pose, b_pose, w_a, b_a, stride=stride)
    Hp = (H - K) // stride + 1
    Wp = (W - K) // stride + 1
    assert out.shape == (N, Hp, Wp, B * (P * P + 1)), out.shape
    assert jnp.allclose(out, ref, atol=1e-4, rtol=1e-4), "mismatch vs reference"

    print("KERNEL_OK")
</pallas_src>

<mosaic_0001>
module attributes {stable_mosaic.version = 11 : i64} {
  func.func @_primarycaps_kernel(%arg0: i32, %arg1: memref<104x40xf32, #tpu.memory_space<vmem>>, %arg2: memref<40x16xf32, #tpu.memory_space<vmem>>, %arg3: memref<1x16xf32, #tpu.memory_space<vmem>>, %arg4: memref<40x4xf32, #tpu.memory_space<vmem>>, %arg5: memref<1x4xf32, #tpu.memory_space<vmem>>, %arg6: memref<104x16xf32, #tpu.memory_space<vmem>>, %arg7: memref<104x4xf32, #tpu.memory_space<vmem>>) attributes {dimension_semantics = [#tpu.dimension_semantics<parallel>], iteration_bounds = array<i64: 1>, scalar_prefetch = 0 : i64, scratch_operands = 0 : i64, tpu.core_type = #tpu.core_type<tc>, window_params = [{transform_indices = @transform_0, window_bounds = array<i64: 104, 40>}, {pipeline_mode = #tpu.pipeline_mode<synchronous>, transform_indices = @transform_1, window_bounds = array<i64: 40, 16>}, {pipeline_mode = #tpu.pipeline_mode<synchronous>, transform_indices = @transform_2, window_bounds = array<i64: 1, 16>}, {pipeline_mode = #tpu.pipeline_mode<synchronous>, transform_indices = @transform_3, window_bounds = array<i64: 40, 4>}, {pipeline_mode = #tpu.pipeline_mode<synchronous>, transform_indices = @transform_4, window_bounds = array<i64: 1, 4>}, {transform_indices = @transform_5, window_bounds = array<i64: 104, 16>}, {transform_indices = @transform_6, window_bounds = array<i64: 104, 4>}]} {
    %c0 = arith.constant 0 : index
    %c0_0 = arith.constant 0 : index
    %0 = vector.load %arg1[%c0, %c0_0] : memref<104x40xf32, #tpu.memory_space<vmem>>, vector<104x40xf32>
    %c0_1 = arith.constant 0 : index
    %c0_2 = arith.constant 0 : index
    %1 = vector.load %arg2[%c0_1, %c0_2] : memref<40x16xf32, #tpu.memory_space<vmem>>, vector<40x16xf32>
    %cst = arith.constant dense<0.000000e+00> : vector<104x16xf32>
    %2 = tpu.matmul %0, %1, %cst {dimension_numbers = #tpu.dot_dimension_numbers<[1], [0], [0], [1], [0, 0, 1, 1], [], []>} : vector<104x40xf32>, vector<40x16xf32>, vector<104x16xf32> -> vector<104x16xf32>
    %c0_3 = arith.constant 0 : index
    %c0_4 = arith.constant 0 : index
    %3 = vector.load %arg3[%c0_3, %c0_4] : memref<1x16xf32, #tpu.memory_space<vmem>>, vector<1x16xf32>
    %4 = vector.broadcast %3 : vector<1x16xf32> to vector<104x16xf32>
    %5 = arith.addf %2, %4 : vector<104x16xf32>
    %c0_5 = arith.constant 0 : index
    %c0_6 = arith.constant 0 : index
    %6 = vector.load %arg4[%c0_5, %c0_6] : memref<40x4xf32, #tpu.memory_space<vmem>>, vector<40x4xf32>
    %cst_7 = arith.constant dense<0.000000e+00> : vector<104x4xf32>
    %7 = tpu.matmul %0, %6, %cst_7 {dimension_numbers = #tpu.dot_dimension_numbers<[1], [0], [0], [1], [0, 0, 1, 1], [], []>} : vector<104x40xf32>, vector<40x4xf32>, vector<104x4xf32> -> vector<104x4xf32>
    %c0_8 = arith.constant 0 : index
    %c0_9 = arith.constant 0 : index
    %8 = vector.load %arg5[%c0_8, %c0_9] : memref<1x4xf32, #tpu.memory_space<vmem>>, vector<1x4xf32>
    %9 = vector.broadcast %8 : vector<1x4xf32> to vector<104x4xf32>
    %10 = arith.addf %7, %9 : vector<104x4xf32>
    %c0_10 = arith.constant 0 : index
    %c0_11 = arith.constant 0 : index
    %11 = vector.load %arg6[%c0_10, %c0_11] : memref<104x16xf32, #tpu.memory_space<vmem>>, vector<104x16xf32>
    tpu.vector_store %arg6[%c0_10, %c0_11], %5 {strides = array<i32>} : memref<104x16xf32, #tpu.memory_space<vmem>>, vector<104x16xf32>,
    %12 = arith.negf %10 : vector<104x4xf32>
    %13 = math.exp %12 : vector<104x4xf32>
    %cst_12 = arith.constant 1.000000e+00 : f32
    %14 = vector.broadcast %cst_12 : f32 to vector<104x4xf32>
    %15 = arith.addf %14, %13 : vector<104x4xf32>
    %16 = arith.divf %14, %15 : vector<104x4xf32>
    %c0_13 = arith.constant 0 : index
    %c0_14 = arith.constant 0 : index
    %17 = vector.load %arg7[%c0_13, %c0_14] : memref<104x4xf32, #tpu.memory_space<vmem>>, vector<104x4xf32>
    tpu.vector_store %arg7[%c0_13, %c0_14], %16 {strides = array<i32>} : memref<104x4xf32, #tpu.memory_space<vmem>>, vector<104x4xf32>,
    return
  }
  func.func @transform_0(%arg0: i32) -> (i32, i32) {
    %c0_i32 = arith.constant 0 : i32
    %c0_i32_0 = arith.constant 0 : i32
    return %arg0, %c0_i32 : i32, i32
  }
  func.func @transform_1(%arg0: i32) -> (i32, i32) {
    %c0_i32 = arith.constant 0 : i32
    %c0_i32_0 = arith.constant 0 : i32
    %c0_i32_1 = arith.constant 0 : i32
    return %c0_i32, %c0_i32_0 : i32, i32
  }
  func.func @transform_2(%arg0: i32) -> (i32, i32) {
    %c0_i32 = arith.constant 0 : i32
    %c0_i32_0 = arith.constant 0 : i32
    %c0_i32_1 = arith.constant 0 : i32
    return %c0_i32, %c0_i32_0 : i32, i32
  }
  func.func @transform_3(%arg0: i32) -> (i32, i32) {
    %c0_i32 = arith.constant 0 : i32
    %c0_i32_0 = arith.constant 0 : i32
    %c0_i32_1 = arith.constant 0 : i32
    return %c0_i32, %c0_i32_0 : i32, i32
  }
  func.func @transform_4(%arg0: i32) -> (i32, i32) {
    %c0_i32 = arith.constant 0 : i32
    %c0_i32_0 = arith.constant 0 : i32
    %c0_i32_1 = arith.constant 0 : i32
    return %c0_i32, %c0_i32_0 : i32, i32
  }
  func.func @transform_5(%arg0: i32) -> (i32, i32) {
    %c0_i32 = arith.constant 0 : i32
    %c0_i32_0 = arith.constant 0 : i32
    return %arg0, %c0_i32 : i32, i32
  }
  func.func @transform_6(%arg0: i32) -> (i32, i32) {
    %c0_i32 = arith.constant 0 : i32
    %c0_i32_0 = arith.constant 0 : i32
    return %arg0, %c0_i32 : i32, i32
  }
}

</mosaic_0001>

<bundles_post_ra>
// kernel: tpu_custom_call.1
= control target key start
LH: loop header
LB: loop body
LE: loop exit
PB: predicated region body
PF: predicated region fallthrough
CT: control target
= control target key end

     0   :  { %v715_v0 = vmov 0.0|0.0   ;;  %vm716_vm0 = vmmov 0   ;;  %v717_v4 = vmov 0.0   ;;  %vm47_vm1 = vcmask 326656   ;;  %s1042_s3 = inlined_call_operand.vmem [shape: f32[40,4], index: 3, kind: input, shape index: {}]   ;;  %s1043_s1 = inlined_call_operand.vmem [shape: f32[40,16], index: 1, kind: input, shape index: {}]   ;;  %s1044_s0 = inlined_call_operand.vmem [shape: f32[104,40], index: 0, kind: input, shape index: {}]   ;;  %s1045_s4 = inlined_call_operand.vmem [shape: f32[1,4], index: 4, kind: input, shape index: {}]   ;;  %s1046_s2 = inlined_call_operand.vmem [shape: f32[1,16], index: 2, kind: input, shape index: {}]   ;;  %s1047_s5 = inlined_call_operand.vmem [shape: f32[104,16], index: 5, kind: output, shape index: {0}]   ;;  %s1048_s6 = inlined_call_operand.vmem [shape: f32[104,4], index: 6, kind: output, shape index: {1}]  }
   0x1   :  { %654 = vmatprep.subr.bf16.mxu1 %v715_v0  ;;  %v217_v1 = vld [vmem:[%s1042_s3] sm:$0xff]  ;;  %v218_v2 = vld [vmem:[%s1042_s3 + $0x8] sm:$0xff]  ;;  %v219_v3 = vld [vmem:[%s1042_s3 + $0x10] sm:$0xff]  ;;  %609 = vmatprep.mubr.msk.f32.mxu1 %vm716_vm0, %v717_v4  ;;  %vm359_vm2 = vcmask 130048   ;;  %vm451_vm3 = vcmask 31744  }
   0x2   :  { %v655_v5 = vpack.c.bf16 %v218_v2, %v217_v1  ;;  %v220_v6 = vld [vmem:[%s1042_s3 + $0x18] sm:$0xff]  ;;  %648 = vmatprep.subr.bf16.mxu0 %v715_v0  ;;  %560 = vmatprep.mubr.msk.f32.mxu0 %vm716_vm0, %v717_v4  ;;  %v35_v8 = vld [vmem:[%s1043_s1] sm:$0xff]  ;;  %v36_v9 = vld [vmem:[%s1043_s1 + $0x8] sm:$0xff] }
   0x3   :  { %v658_v7 = vpack.c.bf16 %v220_v6, %v219_v3  ;;  %v649_v10 = vpack.c.bf16 %v36_v9, %v35_v8  ;;  %v37_v11 = vld [vmem:[%s1043_s1 + $0x10] sm:$0xff]  ;;  %v38_v12 = vld [vmem:[%s1043_s1 + $0x18] sm:$0xff]  ;;  %v221_v14 = vld [vmem:[%s1042_s3 + $0x20] sm:$0xff] }
   0x4   :  { %656 = vmatpush3.bf16.msra.mxu1 %v655_v5  ;;  %v652_v13 = vpack.c.bf16 %v38_v12, %v37_v11  ;;  %v22_v15 = vld [vmem:[%s1044_s0] sm:$0xff]  ;;  %v23_v17 = vld [vmem:[%s1044_s0 + $0x8] sm:$0xff]  ;;  %v24_v18 = vld [vmem:[%s1044_s0 + $0x10] sm:$0xff] }
   0x5   :  { %657 = vmatprep.subr.bf16.mxu1 %v715_v0  ;;  %650 = vmatpush3.bf16.msra.mxu0 %v649_v10  ;;  %v39_v16 = vld [vmem:[%s1043_s1 + $0x20] sm:$0xff]  ;;  %v25_v19 = vld [vmem:[%s1044_s0 + $0x18] sm:$0xff]  ;;  %v27_v21 = vld [vmem:[%s1044_s0 + $0x28] sm:$0xff] }
   0x6   :  { %651 = vmatprep.subr.bf16.mxu0 %v715_v0  ;;  %v26_v20 = vld [vmem:[%s1044_s0 + $0x20] sm:$0xff]  ;;  %v28_v22 = vld [vmem:[%s1044_s0 + $0x30] sm:$0xff]  ;;  %v29_v23 = vld [vmem:[%s1044_s0 + $0x38] sm:$0xff] }
   0x7   :  { %v30_v24 = vld [vmem:[%s1044_s0 + $0x40] sm:$0xff]  ;;  %v31_v25 = vld [vmem:[%s1044_s0 + $0x48] sm:$0xff]  ;;  %v32_v26 = vld [vmem:[%s1044_s0 + $0x50] sm:$0xff] }
   0x8   :  { %659 = vmatpush3.bf16.msra.mxu1 %v658_v7  ;;  %v33_v27 = vld [vmem:[%s1044_s0 + $0x58] sm:$0xff]  ;;  %v34_v28 = vld [vmem:[%s1044_s0 + $0x60] sm:$0xff] }
   0x9   :  { %607 = vmatprep.subr.mxu1 %v717_v4  ;;  %653 = vmatpush3.bf16.msra.mxu0 %v652_v13  ;;  %v905_v29 = vld [vmem:[%s1045_s4] ss:$0 sm:$0xff] }
   0xa   :  { %558 = vmatprep.subr.mxu0 %v717_v4  ;;  %v911_v33 = vld [vmem:[%s1046_s2] ss:$0 sm:$0xff] }
   0xc   :  { %608 = vmatpush3.msra.mxu1 %v221_v14 }
   0xd   :  { %610 = vmatmul.mubr.msk.f32.vlgmr.msra.gmra.mrb[0].mxu1 %vm47_vm1, %v22_v15  ;;  %559 = vmatpush3.msra.mxu0 %v39_v16 }
   0xe   :  { %612 = vmatprep.mubr.msk.f32.mxu1 %vm716_vm0, %v717_v4  ;;  %561 = vmatmul.mubr.msk.f32.vlgmr.msra.gmra.mrb[0].mxu0 %vm47_vm1, %v22_v15 }
   0xf   :  { %563 = vmatprep.mubr.msk.f32.mxu0 %vm716_vm0, %v717_v4 }
  0x11   :  { %613 = vmatmul.mubr.msk.f32.gmra.mrb[2].mxu1 %vm47_vm1, %v23_v17 }
  0x12   :  { %615 = vmatprep.mubr.msk.f32.mxu1 %vm716_vm0, %v717_v4  ;;  %564 = vmatmul.mubr.msk.f32.gmra.mrb[2].mxu0 %vm47_vm1, %v23_v17 }
  0x13   :  { %566 = vmatprep.mubr.msk.f32.mxu0 %vm716_vm0, %v717_v4 }
  0x15   :  { %616 = vmatmul.mubr.msk.f32.gmra.mrb[4].mxu1 %vm47_vm1, %v24_v18 }
  0x16   :  { %618 = vmatprep.mubr.msk.f32.mxu1 %vm716_vm0, %v717_v4  ;;  %567 = vmatmul.mubr.msk.f32.gmra.mrb[4].mxu0 %vm47_vm1, %v24_v18 }
  0x17   :  { %569 = vmatprep.mubr.msk.f32.mxu0 %vm716_vm0, %v717_v4 }
  0x19   :  { %619 = vmatmul.mubr.msk.f32.gmra.mrb[6].mxu1 %vm47_vm1, %v25_v19 }
  0x1a   :  { %621 = vmatprep.mubr.msk.f32.mxu1 %vm716_vm0, %v717_v4  ;;  %570 = vmatmul.mubr.msk.f32.gmra.mrb[6].mxu0 %vm47_vm1, %v25_v19 }
  0x1b   :  { %572 = vmatprep.mubr.msk.f32.mxu0 %vm716_vm0, %v717_v4 }
  0x1d   :  { %622 = vmatmul.mubr.msk.f32.gmra.mrb[8].mxu1 %vm47_vm1, %v26_v20 }
  0x1e   :  { %624 = vmatprep.mubr.msk.f32.mxu1 %vm716_vm0, %v717_v4  ;;  %573 = vmatmul.mubr.msk.f32.gmra.mrb[8].mxu0 %vm47_vm1, %v26_v20 }
  0x1f   :  { %575 = vmatprep.mubr.msk.f32.mxu0 %vm716_vm0, %v717_v4 }
  0x21   :  { %625 = vmatmul.mubr.msk.f32.gmra.mrb[10].mxu1 %vm47_vm1, %v27_v21 }
  0x22   :  { %627 = vmatprep.mubr.msk.f32.mxu1 %vm716_vm0, %v717_v4  ;;  %576 = vmatmul.mubr.msk.f32.gmra.mrb[10].mxu0 %vm47_vm1, %v27_v21 }
  0x23   :  { %578 = vmatprep.mubr.msk.f32.mxu0 %vm716_vm0, %v717_v4 }
  0x25   :  { %628 = vmatmul.mubr.msk.f32.gmra.mrb[12].mxu1 %vm47_vm1, %v28_v22 }
  0x26   :  { %630 = vmatprep.mubr.msk.f32.mxu1 %vm716_vm0, %v717_v4  ;;  %579 = vmatmul.mubr.msk.f32.gmra.mrb[12].mxu0 %vm47_vm1, %v28_v22 }
  0x27   :  { %581 = vmatprep.mubr.msk.f32.mxu0 %vm716_vm0, %v717_v4 }
  0x29   :  { %631 = vmatmul.mubr.msk.f32.gmra.mrb[14].mxu1 %vm47_vm1, %v29_v23 }
  0x2a   :  { %633 = vmatprep.mubr.msk.f32.mxu1 %vm716_vm0, %v717_v4  ;;  %582 = vmatmul.mubr.msk.f32.gmra.mrb[14].mxu0 %vm47_vm1, %v29_v23 }
  0x2b   :  { %584 = vmatprep.mubr.msk.f32.mxu0 %vm716_vm0, %v717_v4 }
  0x2d   :  { %634 = vmatmul.mubr.msk.f32.gmra.mrb[16].mxu1 %vm47_vm1, %v30_v24 }
  0x2e   :  { %636 = vmatprep.mubr.msk.f32.mxu1 %vm716_vm0, %v717_v4  ;;  %585 = vmatmul.mubr.msk.f32.gmra.mrb[16].mxu0 %vm47_vm1, %v30_v24 }
  0x2f   :  { %587 = vmatprep.mubr.msk.f32.mxu0 %vm716_vm0, %v717_v4 }
  0x31   :  { %637 = vmatmul.mubr.msk.f32.gmra.mrb[18].mxu1 %vm47_vm1, %v31_v25 }
  0x32   :  { %639 = vmatprep.mubr.msk.f32.mxu1 %vm716_vm0, %v717_v4  ;;  %588 = vmatmul.mubr.msk.f32.gmra.mrb[18].mxu0 %vm47_vm1, %v31_v25 }
  0x33   :  { %590 = vmatprep.mubr.msk.f32.mxu0 %vm716_vm0, %v717_v4 }
  0x35   :  { %640 = vmatmul.mubr.msk.f32.gmra.mrb[20].mxu1 %vm47_vm1, %v32_v26 }
  0x36   :  { %642 = vmatprep.mubr.msk.f32.mxu1 %vm716_vm0, %v717_v4  ;;  %591 = vmatmul.mubr.msk.f32.gmra.mrb[20].mxu0 %vm47_vm1, %v32_v26 }
  0x37   :  { %593 = vmatprep.mubr.msk.f32.mxu0 %vm716_vm0, %v717_v4 }
  0x39   :  { %643 = vmatmul.mubr.msk.f32.gmra.mrb[22].mxu1 %vm47_vm1, %v33_v27 }
  0x3a   :  { %645 = vmatprep.mubr.msk.f32.mxu1 %vm716_vm0, %v717_v4  ;;  %594 = vmatmul.mubr.msk.f32.gmra.mrb[22].mxu0 %vm47_vm1, %v33_v27 }
  0x3b   :  { %596 = vmatprep.mubr.msk.f32.mxu0 %vm716_vm0, %v717_v4 }
  0x3d   :  { %646 = vmatmul.mubr.msk.f32.gmra.mrb[24].mxu1 %vm47_vm1, %v34_v28 }
  0x3e   :  { %597 = vmatmul.mubr.msk.f32.gmra.mrb[24].mxu0 %vm47_vm1, %v34_v28 }
  0xe0   :  { %v295_v30 = vpop.f32.mrb[0].mxu1 }
  0xe1   :  { %v296_v31 = vadd.f32 %v905_v29, %v295_v30  ;;  %v611_v32 = vpop.f32.mrb[1].mxu1  ;;  %v153_v35 = vpop.f32.mrb[0].mxu0 }
  0xe2   :  { %v154_v37 = vadd.f32 %v911_v33, %v153_v35  ;;  %v562_v38 = vpop.f32.mrb[1].mxu0 }
  0xe3   :  { %v501_v34 = vmul.f32 -1.442695, %v296_v31 }
  0xe4   :  { %v300_v36 = vpop.f32.mrb[2].mxu1  ;;  %360 = vst.msk [vmem:[%s1047_s5] sm:$0xff] %vm359_vm2, %v154_v37 }
  0xe5   :  { %663 = vpow2.f32 %v501_v34  ;;  %v301_v39 = vadd.f32 %v905_v29, %v300_v36  ;;  %v614_v40 = vpop.f32.mrb[3].mxu1  ;;  %v158_v42 = vpop.f32.mrb[2].mxu0 }
  0xe6   :  { %v159_v44 = vadd.f32 %v911_v33, %v158_v42  ;;  %v565_v45 = vpop.f32.mrb[3].mxu0 }
  0xe7   :  { %v502_v41 = vmul.f32 -1.442695, %v301_v39 }
  0xe8   :  { %v305_v43 = vpop.f32.mrb[4].mxu1  ;;  %361 = vst.msk [vmem:[%s1047_s5 + $0x8] sm:$0xff] %vm359_vm2, %v159_v44 }
  0xe9   :  { %665 = vpow2.f32 %v502_v41  ;;  %v306_v46 = vadd.f32 %v905_v29, %v305_v43  ;;  %v617_v47 = vpop.f32.mrb[5].mxu1  ;;  %v163_v49 = vpop.f32.mrb[4].mxu0 }
  0xea   :  { %v164_v51 = vadd.f32 %v911_v33, %v163_v49  ;;  %v568_v52 = vpop.f32.mrb[5].mxu0 }
  0xeb   :  { %v503_v48 = vmul.f32 -1.442695, %v306_v46 }
  0xec   :  { %v310_v50 = vpop.f32.mrb[6].mxu1  ;;  %362 = vst.msk [vmem:[%s1047_s5 + $0x10] sm:$0xff] %vm359_vm2, %v164_v51 }
  0xed   :  { %667 = vpow2.f32 %v503_v48  ;;  %v311_v53 = vadd.f32 %v905_v29, %v310_v50  ;;  %v620_v54 = vpop.f32.mrb[7].mxu1  ;;  %v168_v57 = vpop.f32.mrb[6].mxu0 }
  0xee   :  { %v169_v60 = vadd.f32 %v911_v33, %v168_v57  ;;  %v571_v61 = vpop.f32.mrb[7].mxu0 }
  0xef   :  { %v664_v55 = vpop.eup %663  ;;  %v504_v56 = vmul.f32 -1.442695, %v311_v53 }
  0xf0   :  { %v412_v58 = vadd.f32 1.0, %v664_v55  ;;  %v315_v59 = vpop.f32.mrb[8].mxu1  ;;  %363 = vst.msk [vmem:[%s1047_s5 + $0x18] sm:$0xff] %vm359_vm2, %v169_v60 }
  0xf1   :  { %669 = vpow2.f32 %v504_v56  ;;  %v316_v62 = vadd.f32 %v905_v29, %v315_v59  ;;  %v623_v63 = vpop.f32.mrb[9].mxu1  ;;  %v173_v2 = vpop.f32.mrb[8].mxu0 }
  0xf2   :  { %671 = vrcp.f32 %v412_v58  ;;  %v174_v5 = vadd.f32 %v911_v33, %v173_v2  ;;  %v574_v6 = vpop.f32.mrb[9].mxu0 }
  0xf3   :  { %v666_v0 = vpop.eup %665  ;;  %v505_v1 = vmul.f32 -1.442695, %v316_v62 }
  0xf4   :  { %v413_v3 = vadd.f32 1.0, %v666_v0  ;;  %v320_v4 = vpop.f32.mrb[10].mxu1  ;;  %364 = vst.msk [vmem:[%s1047_s5 + $0x20] sm:$0xff] %vm359_vm2, %v174_v5 }
  0xf5   :  { %673 = vpow2.f32 %v505_v1  ;;  %v321_v7 = vadd.f32 %v905_v29, %v320_v4  ;;  %v626_v8 = vpop.f32.mrb[11].mxu1  ;;  %v178_v11 = vpop.f32.mrb[10].mxu0 }
  0xf6   :  { %675 = vrcp.f32 %v413_v3  ;;  %v179_v14 = vadd.f32 %v911_v33, %v178_v11  ;;  %v577_v15 = vpop.f32.mrb[11].mxu0 }
  0xf7   :  { %v668_v9 = vpop.eup %667  ;;  %v506_v10 = vmul.f32 -1.442695, %v321_v7 }
  0xf8   :  { %v414_v12 = vadd.f32 1.0, %v668_v9  ;;  %v325_v13 = vpop.f32.mrb[12].mxu1  ;;  %365 = vst.msk [vmem:[%s1047_s5 + $0x28] sm:$0xff] %vm359_vm2, %v179_v14 }
  0xf9   :  { %677 = vpow2.f32 %v506_v10  ;;  %v326_v16 = vadd.f32 %v905_v29, %v325_v13  ;;  %v629_v17 = vpop.f32.mrb[13].mxu1  ;;  %v183_v20 = vpop.f32.mrb[12].mxu0 }
  0xfa   :  { %679 = vrcp.f32 %v414_v12  ;;  %v184_v24 = vadd.f32 %v911_v33, %v183_v20  ;;  %v580_v25 = vpop.f32.mrb[13].mxu0 }
  0xfb   :  { %v670_v18 = vpop.eup %669  ;;  %v507_v19 = vmul.f32 -1.442695, %v326_v16 }
  0xfc   :  { %v672_v21 = vpop.eup %671  ;;  %v415_v22 = vadd.f32 1.0, %v670_v18  ;;  %v330_v23 = vpop.f32.mrb[14].mxu1  ;;  %366 = vst.msk [vmem:[%s1047_s5 + $0x30] sm:$0xff] %vm359_vm2, %v184_v24 }
  0xfd   :  { %452 = vst.msk [vmem:[%s1048_s6] sm:$0xff] %vm451_vm3, %v672_v21  ;;  %681 = vpow2.f32 %v507_v19  ;;  %v331_v26 = vadd.f32 %v905_v29, %v330_v23  ;;  %v632_v27 = vpop.f32.mrb[15].mxu1  ;;  %v188_v31 = vpop.f32.mrb[14].mxu0 }
  0xfe   :  { %683 = vrcp.f32 %v415_v22  ;;  %v189_v36 = vadd.f32 %v911_v33, %v188_v31  ;;  %v583_v37 = vpop.f32.mrb[15].mxu0 }
  0xff   :  { %v674_v28 = vpop.eup %673  ;;  %v508_v30 = vmul.f32 -1.442695, %v331_v26 }
 0x100   :  { %v676_v32 = vpop.eup %675  ;;  %v416_v34 = vadd.f32 1.0, %v674_v28  ;;  %v335_v35 = vpop.f32.mrb[16].mxu1  ;;  %367 = vst.msk [vmem:[%s1047_s5 + $0x38] sm:$0xff] %vm359_vm2, %v189_v36 }
 0x101   :  { %453 = vst.msk [vmem:[%s1048_s6 + $0x8] sm:$0xff] %vm451_vm3, %v676_v32  ;;  %685 = vpow2.f32 %v508_v30  ;;  %v336_v38 = vadd.f32 %v905_v29, %v335_v35  ;;  %v635_v39 = vpop.f32.mrb[17].mxu1  ;;  %v193_v42 = vpop.f32.mrb[16].mxu0 }
 0x102   :  { %687 = vrcp.f32 %v416_v34  ;;  %v194_v46 = vadd.f32 %v911_v33, %v193_v42  ;;  %v586_v47 = vpop.f32.mrb[17].mxu0 }
 0x103   :  { %v678_v40 = vpop.eup %677  ;;  %v509_v41 = vmul.f32 -1.442695, %v336_v38 }
 0x104   :  { %v680_v43 = vpop.eup %679  ;;  %v417_v44 = vadd.f32 1.0, %v678_v40  ;;  %v340_v45 = vpop.f32.mrb[18].mxu1  ;;  %368 = vst.msk [vmem:[%s1047_s5 + $0x40] sm:$0xff] %vm359_vm2, %v194_v46 }
 0x105   :  { %454 = vst.msk [vmem:[%s1048_s6 + $0x10] sm:$0xff] %vm451_vm3, %v680_v43  ;;  %689 = vpow2.f32 %v509_v41  ;;  %v341_v48 = vadd.f32 %v905_v29, %v340_v45  ;;  %v638_v49 = vpop.f32.mrb[19].mxu1  ;;  %v198_v52 = vpop.f32.mrb[18].mxu0 }
 0x106   :  { %691 = vrcp.f32 %v417_v44  ;;  %v199_v56 = vadd.f32 %v911_v33, %v198_v52  ;;  %v589_v57 = vpop.f32.mrb[19].mxu0 }
 0x107   :  { %v682_v50 = vpop.eup %681  ;;  %v510_v51 = vmul.f32 -1.442695, %v341_v48 }
 0x108   :  { %v684_v53 = vpop.eup %683  ;;  %v418_v54 = vadd.f32 1.0, %v682_v50  ;;  %v345_v55 = vpop.f32.mrb[20].mxu1  ;;  %369 = vst.msk [vmem:[%s1047_s5 + $0x48] sm:$0xff] %vm359_vm2, %v199_v56 }
 0x109   :  { %455 = vst.msk [vmem:[%s1048_s6 + $0x18] sm:$0xff] %vm451_vm3, %v684_v53  ;;  %693 = vpow2.f32 %v510_v51  ;;  %v346_v58 = vadd.f32 %v905_v29, %v345_v55  ;;  %v641_v59 = vpop.f32.mrb[21].mxu1  ;;  %v203_v62 = vpop.f32.mrb[20].mxu0 }
 0x10a   :  { %695 = vrcp.f32 %v418_v54  ;;  %v204_v2 = vadd.f32 %v911_v33, %v203_v62  ;;  %v592_v3 = vpop.f32.mrb[21].mxu0 }
 0x10b   :  { %v686_v60 = vpop.eup %685  ;;  %v511_v61 = vmul.f32 -1.442695, %v346_v58 }
 0x10c   :  { %v688_v63 = vpop.eup %687  ;;  %v419_v0 = vadd.f32 1.0, %v686_v60  ;;  %v350_v1 = vpop.f32.mrb[22].mxu1  ;;  %370 = vst.msk [vmem:[%s1047_s5 + $0x50] sm:$0xff] %vm359_vm2, %v204_v2 }
 0x10d   :  { %456 = vst.msk [vmem:[%s1048_s6 + $0x20] sm:$0xff] %vm451_vm3, %v688_v63  ;;  %697 = vpow2.f32 %v511_v61  ;;  %v351_v4 = vadd.f32 %v905_v29, %v350_v1  ;;  %v644_v5 = vpop.f32.mrb[23].mxu1  ;;  %v208_v8 = vpop.f32.mrb[22].mxu0 }
 0x10e   :  { %699 = vrcp.f32 %v419_v0  ;;  %v209_v12 = vadd.f32 %v911_v33, %v208_v8  ;;  %v595_v13 = vpop.f32.mrb[23].mxu0 }
 0x10f   :  { %v690_v6 = vpop.eup %689  ;;  %v512_v7 = vmul.f32 -1.442695, %v351_v4 }
 0x110   :  { %v692_v9 = vpop.eup %691  ;;  %v420_v10 = vadd.f32 1.0, %v690_v6  ;;  %v355_v11 = vpop.f32.mrb[24].mxu1  ;;  %371 = vst.msk [vmem:[%s1047_s5 + $0x58] sm:$0xff] %vm359_vm2, %v209_v12 }
 0x111   :  { %457 = vst.msk [vmem:[%s1048_s6 + $0x28] sm:$0xff] %vm451_vm3, %v692_v9  ;;  %701 = vpow2.f32 %v512_v7  ;;  %v356_v14 = vadd.f32 %v905_v29, %v355_v11  ;;  %v647_v15 = vpop.f32.mrb[25].mxu1  ;;  %v213_v18 = vpop.f32.mrb[24].mxu0 }
 0x112   :  { %703 = vrcp.f32 %v420_v10  ;;  %v214_v21 = vadd.f32 %v911_v33, %v213_v18  ;;  %v598_v22 = vpop.f32.mrb[25].mxu0 }
 0x113   :  { %v694_v16 = vpop.eup %693  ;;  %v513_v17 = vmul.f32 -1.442695, %v356_v14 }
 0x114   :  { %v696_v19 = vpop.eup %695  ;;  %v421_v20 = vadd.f32 1.0, %v694_v16  ;;  %372 = vst.msk [vmem:[%s1047_s5 + $0x60] sm:$0xff] %vm359_vm2, %v214_v21 }
 0x115   :  { %458 = vst.msk [vmem:[%s1048_s6 + $0x30] sm:$0xff] %vm451_vm3, %v696_v19  ;;  %705 = vpow2.f32 %v513_v17 }
 0x116   :  { %707 = vrcp.f32 %v421_v20 }
 0x117   :  { %v698_v29 = vpop.eup %697 }
 0x118   :  { %v700_v23 = vpop.eup %699  ;;  %v422_v24 = vadd.f32 1.0, %v698_v29 }
 0x119   :  { %459 = vst.msk [vmem:[%s1048_s6 + $0x38] sm:$0xff] %vm451_vm3, %v700_v23 }
 0x11a   :  { %709 = vrcp.f32 %v422_v24 }
 0x11b   :  { %v702_v33 = vpop.eup %701 }
 0x11c   :  { %v704_v25 = vpop.eup %703  ;;  %v423_v26 = vadd.f32 1.0, %v702_v33 }
 0x11d   :  { %460 = vst.msk [vmem:[%s1048_s6 + $0x40] sm:$0xff] %vm451_vm3, %v704_v25 }
 0x11e   :  { %711 = vrcp.f32 %v423_v26 }
 0x11f   :  { %v706_v27 = vpop.eup %705 }
 0x120   :  { %v708_v28 = vpop.eup %707  ;;  %v424_v30 = vadd.f32 1.0, %v706_v27 }
 0x121   :  { %461 = vst.msk [vmem:[%s1048_s6 + $0x48] sm:$0xff] %vm451_vm3, %v708_v28 }
 0x122   :  { %713 = vrcp.f32 %v424_v30 }
 0x124   :  { %v710_v31 = vpop.eup %709 }
 0x125   :  { %462 = vst.msk [vmem:[%s1048_s6 + $0x50] sm:$0xff] %vm451_vm3, %v710_v31 }
 0x128   :  { %v712_v32 = vpop.eup %711 }
 0x129   :  { %463 = vst.msk [vmem:[%s1048_s6 + $0x58] sm:$0xff] %vm451_vm3, %v712_v32 }
 0x12c   :  { %v714_v34 = vpop.eup %713 }
 0x12d   :  { %464 = vst.msk [vmem:[%s1048_s6 + $0x60] sm:$0xff] %vm451_vm3, %v714_v34 }

</bundles_post_ra>
